<compile_context>
chip_gen: v7x
topology: tpu7x:2x2x1
jax: 0.10.0
libtpu: 0.0.40
codegen_flags: <defaults>
</compile_context>

<pallas_src>
import numpy as np
import jax
import jax.numpy as jnp
from jax.experimental import pallas as pl
from jax.experimental.pallas import tpu as pltpu


def _round_up(x, m):
    return (x + m - 1) // m * m


# ----------------------------- Pallas kernel --------------------------------
def shallom_kernel(head_ref, rel_ref, tail_ref,
                   w1h_ref, w1r_ref, w1t_ref, b1_ref,
                   w2_ref, b2_ref, o_ref):
    # head_ref/tail_ref: (TB, D) bf16     rel_ref: (TB, Dr) bf16
    # w1h_ref/w1t_ref:   (D, W3) bf16     w1r_ref: (Dr, W3) bf16   (BN pre-folded)
    # b1_ref:            (1, W3) f32      (BN pre-folded)
    # w2_ref:            (1, W3) f32      b2_ref: (1, 1) f32 in SMEM
    # o_ref:             (TB, 1) f32

    # Linear1 split across the concat boundary -> never materialize x in HBM.
    # bf16 x bf16 on the MXU, f32 accumulation.
    h = jnp.dot(head_ref[...], w1h_ref[...], preferred_element_type=jnp.float32)
    h = h + jnp.dot(rel_ref[...], w1r_ref[...], preferred_element_type=jnp.float32)
    h = h + jnp.dot(tail_ref[...], w1t_ref[...], preferred_element_type=jnp.float32)
    h = h + b1_ref[...]

    # Dropout(0.5) layers -> identity in inference.
    # TODO(synk): training-mode dropout (stochastic masking) intentionally omitted.

    # ReLU (BN already folded into w1/b1).
    h = jnp.maximum(h, 0.0)

    # Linear2 (out_features = 1): VPU multiply + lane reduce instead of a
    # 1-column MXU matmul; fold + b2 and sigmoid into the same pass.
    y = jnp.sum(h * w2_ref[...], axis=-1, keepdims=True) + b2_ref[0, 0]
    o_ref[...] = jax.nn.sigmoid(y).astype(o_ref.dtype)


def shallom_forward(head, rel, tail, w1h, w1r, w1t, b1, w2_row, b2, *, tb=1024):
    """Run the fused MLP. head/tail: (B, D) bf16, rel: (B, Dr) bf16."""
    B, D = head.shape
    Dr = rel.shape[1]
    W3 = b1.shape[1]

    # Batch tile: multiple of 8 (sublane), capped so two in-flight buffers of the
    # three activation tiles plus resident weights stay well under v7x's 64 MiB
    # VMEM (TB=1024, F~O(1k) bf16 is < 10 MiB).
    TB = min(tb, _round_up(B, 8))
    TB = _round_up(TB, 8)
    B_pad = _round_up(B, TB)
    if B_pad != B:
        pad = B_pad - B
        head = jnp.pad(head, ((0, pad), (0, 0)))
        rel = jnp.pad(rel, ((0, pad), (0, 0)))
        tail = jnp.pad(tail, ((0, pad), (0, 0)))

    grid = (B_pad // TB,)

    out = pl.pallas_call(
        shallom_kernel,
        out_shape=jax.ShapeDtypeStruct((B_pad, 1), jnp.float32),
        grid=grid,
        in_specs=[
            # Streamed activation tiles (double-buffered by the pipeline).
            pl.BlockSpec((TB, D), lambda i: (i, 0)),
            pl.BlockSpec((TB, Dr), lambda i: (i, 0)),
            pl.BlockSpec((TB, D), lambda i: (i, 0)),
            # Weights: constant index_map -> DMA'd once, VMEM-resident.
            pl.BlockSpec((D, W3), lambda i: (0, 0)),
            pl.BlockSpec((Dr, W3), lambda i: (0, 0)),
            pl.BlockSpec((D, W3), lambda i: (0, 0)),
            pl.BlockSpec((1, W3), lambda i: (0, 0)),
            pl.BlockSpec((1, W3), lambda i: (0, 0)),
            # Scalar bias of Linear2 -> SMEM (free vs a padded VMEM tile).
            pl.BlockSpec((1, 1), lambda i: (0, 0),
                         memory_space=pltpu.MemorySpace.SMEM),
        ],
        out_specs=pl.BlockSpec((TB, 1), lambda i: (i, 0)),
        compiler_params=pltpu.CompilerParams(
            dimension_semantics=("parallel",)),
    )(head, rel, tail, w1h, w1r, w1t, b1, w2_row, b2)

    return out[:B]


# ------------------------------ Full model -----------------------------------
def baseline_embeddings_only_forward(prep, e1_idx, rel_idx, e2_idx):
    # Embedding lookups (glue in plain JAX, tables stored bf16).
    head = prep["ent_emb"][e1_idx]          # (B, D)  bf16
    rel = prep["rel_emb"][rel_idx]          # (B, Dr) bf16
    tail = prep["ent_emb"][e2_idx]          # (B, D)  bf16
    return shallom_forward(
        head, rel, tail,
        prep["w1h"], prep["w1r"], prep["w1t"], prep["b1"],
        prep["w2_row"], prep["b2"],
    )


def init_params(key, num_entities, num_relations, embedding_dim, embedding_dim_rel):
    """Raw (PyTorch-equivalent) parameters, all f32."""
    D, Dr = embedding_dim, embedding_dim_rel
    width3 = int(1 * D)               # shallom_width3
    F = 2 * D + Dr

    ks = jax.random.split(key, 8)

    # Frozen pretrained-style embedding tables (deterministic synthetic init).
    ent_emb = jax.random.normal(ks[0], (num_entities, D), jnp.float32)
    rel_emb = jax.random.normal(ks[1], (num_relations, Dr), jnp.float32)

    # Linear(F -> width3): torch default init U(-1/sqrt(F), 1/sqrt(F)); stored
    # transposed as [in, out].
    lim1 = 1.0 / np.sqrt(F)
    w1 = jax.random.uniform(ks[2], (F, width3), jnp.float32, -lim1, lim1)
    b1 = jax.random.uniform(ks[3], (1, width3), jnp.float32, -lim1, lim1)

    # BatchNorm1d(width3) fresh init (eval-mode running stats).
    bn_gamma = jnp.ones((1, width3), jnp.float32)
    bn_beta = jnp.zeros((1, width3), jnp.float32)
    bn_mean = jnp.zeros((1, width3), jnp.float32)
    bn_var = jnp.ones((1, width3), jnp.float32)

    # Linear(width3 -> 1); stored transposed as [in, out].
    lim2 = 1.0 / np.sqrt(width3)
    w2 = jax.random.uniform(ks[4], (width3, 1), jnp.float32, -lim2, lim2)
    b2 = jax.random.uniform(ks[5], (1, 1), jnp.float32, -lim2, lim2)

    return {
        "ent_emb": ent_emb, "rel_emb": rel_emb,
        "w1": w1, "b1": b1,
        "bn_gamma": bn_gamma, "bn_beta": bn_beta,
        "bn_mean": bn_mean, "bn_var": bn_var,
        "w2": w2, "b2": b2,
        "D": D, "Dr": Dr, "W3": width3,
    }


def prepare_inference_params(params):
    """Fold eval-mode BN into Linear1 (in f32), split w1 across the concat,
    and cast the bandwidth-dominant tensors to bf16."""
    eps = 1e-5
    D, Dr = params["D"], params["Dr"]

    scale = params["bn_gamma"] * jax.lax.rsqrt(params["bn_var"] + eps)   # (1, W3)
    w1_f = params["w1"] * scale                                          # fold in f32
    b1_f = (params["b1"] - params["bn_mean"]) * scale + params["bn_beta"]

    return {
        "ent_emb": params["ent_emb"].astype(jnp.bfloat16),
        "rel_emb": params["rel_emb"].astype(jnp.bfloat16),
        "w1h": w1_f[:D].astype(jnp.bfloat16),
        "w1r": w1_f[D:D + Dr].astype(jnp.bfloat16),
        "w1t": w1_f[D + Dr:].astype(jnp.bfloat16),
        "b1": b1_f.astype(jnp.float32),
        "w2_row": params["w2"].T.astype(jnp.float32),   # (1, W3)
        "b2": params["b2"].astype(jnp.float32),         # (1, 1) -> SMEM
    }


if __name__ == "__main__":
    # Small deterministic configuration
    num_entities = 20
    num_relations = 6
    embedding_dim = 32       # D  (=> W3 = 32)
    embedding_dim_rel = 16   # Dr
    batch = 8

    key = jax.random.PRNGKey(0)
    pkey, ik1, ik2, ik3 = jax.random.split(key, 4)

    params = init_params(pkey, num_entities, num_relations,
                         embedding_dim, embedding_dim_rel)
    prep = prepare_inference_params(params)

    e1_idx = jax.random.randint(ik1, (batch,), 0, num_entities, jnp.int32)
    rel_idx = jax.random.randint(ik2, (batch,), 0, num_relations, jnp.int32)
    e2_idx = jax.random.randint(ik3, (batch,), 0, num_entities, jnp.int32)

    out = baseline_embeddings_only_forward(prep, e1_idx, rel_idx, e2_idx)
    out = jax.block_until_ready(out)

    assert out.shape == (batch, 1)
    assert bool(jnp.all((out > 0.0) & (out < 1.0)))
    assert bool(jnp.all(jnp.isfinite(out)))
    print("KERNEL_OK")
</pallas_src>

<mosaic_0001>
module attributes {stable_mosaic.version = 11 : i64} {
  func.func @shallom_kernel(%arg0: i32, %arg1: memref<8x32xbf16, #tpu.memory_space<vmem>>, %arg2: memref<8x16xbf16, #tpu.memory_space<vmem>>, %arg3: memref<8x32xbf16, #tpu.memory_space<vmem>>, %arg4: memref<32x32xbf16, #tpu.memory_space<vmem>>, %arg5: memref<16x32xbf16, #tpu.memory_space<vmem>>, %arg6: memref<32x32xbf16, #tpu.memory_space<vmem>>, %arg7: memref<1x32xf32, #tpu.memory_space<vmem>>, %arg8: memref<1x32xf32, #tpu.memory_space<vmem>>, %arg9: memref<1x1xf32, #tpu.memory_space<smem>>, %arg10: memref<8x1xf32, #tpu.memory_space<vmem>>) attributes {dimension_semantics = [#tpu.dimension_semantics<parallel>], iteration_bounds = array<i64: 1>, scalar_prefetch = 0 : i64, scratch_operands = 0 : i64, tpu.core_type = #tpu.core_type<tc>, window_params = [{transform_indices = @transform_0, window_bounds = array<i64: 8, 32>}, {transform_indices = @transform_1, window_bounds = array<i64: 8, 16>}, {transform_indices = @transform_2, window_bounds = array<i64: 8, 32>}, {pipeline_mode = #tpu.pipeline_mode<synchronous>, transform_indices = @transform_3, window_bounds = array<i64: 32, 32>}, {pipeline_mode = #tpu.pipeline_mode<synchronous>, transform_indices = @transform_4, window_bounds = array<i64: 16, 32>}, {pipeline_mode = #tpu.pipeline_mode<synchronous>, transform_indices = @transform_5, window_bounds = array<i64: 32, 32>}, {pipeline_mode = #tpu.pipeline_mode<synchronous>, transform_indices = @transform_6, window_bounds = array<i64: 1, 32>}, {pipeline_mode = #tpu.pipeline_mode<synchronous>, transform_indices = @transform_7, window_bounds = array<i64: 1, 32>}, {transform_indices = @transform_8, window_bounds = array<i64: 1, 1>}, {transform_indices = @transform_9, window_bounds = array<i64: 8, 1>}]} {
    %c0 = arith.constant 0 : index
    %c0_0 = arith.constant 0 : index
    %0 = vector.load %arg1[%c0, %c0_0] : memref<8x32xbf16, #tpu.memory_space<vmem>>, vector<8x32xbf16>
    %c0_1 = arith.constant 0 : index
    %c0_2 = arith.constant 0 : index
    %1 = vector.load %arg4[%c0_1, %c0_2] : memref<32x32xbf16, #tpu.memory_space<vmem>>, vector<32x32xbf16>
    %cst = arith.constant dense<0.000000e+00> : vector<8x32xf32>
    %2 = tpu.matmul %0, %1, %cst {dimension_numbers = #tpu.dot_dimension_numbers<[1], [0], [0], [1], [0, 0, 1, 1], [], []>} : vector<8x32xbf16>, vector<32x32xbf16>, vector<8x32xf32> -> vector<8x32xf32>
    %c0_3 = arith.constant 0 : index
    %c0_4 = arith.constant 0 : index
    %3 = vector.load %arg2[%c0_3, %c0_4] : memref<8x16xbf16, #tpu.memory_space<vmem>>, vector<8x16xbf16>
    %c0_5 = arith.constant 0 : index
    %c0_6 = arith.constant 0 : index
    %4 = vector.load %arg5[%c0_5, %c0_6] : memref<16x32xbf16, #tpu.memory_space<vmem>>, vector<16x32xbf16>
    %cst_7 = arith.constant dense<0.000000e+00> : vector<8x32xf32>
    %5 = tpu.matmul %3, %4, %cst_7 {dimension_numbers = #tpu.dot_dimension_numbers<[1], [0], [0], [1], [0, 0, 1, 1], [], []>} : vector<8x16xbf16>, vector<16x32xbf16>, vector<8x32xf32> -> vector<8x32xf32>
    %6 = arith.addf %2, %5 : vector<8x32xf32>
    %c0_8 = arith.constant 0 : index
    %c0_9 = arith.constant 0 : index
    %7 = vector.load %arg3[%c0_8, %c0_9] : memref<8x32xbf16, #tpu.memory_space<vmem>>, vector<8x32xbf16>
    %c0_10 = arith.constant 0 : index
    %c0_11 = arith.constant 0 : index
    %8 = vector.load %arg6[%c0_10, %c0_11] : memref<32x32xbf16, #tpu.memory_space<vmem>>, vector<32x32xbf16>
    %cst_12 = arith.constant dense<0.000000e+00> : vector<8x32xf32>
    %9 = tpu.matmul %7, %8, %cst_12 {dimension_numbers = #tpu.dot_dimension_numbers<[1], [0], [0], [1], [0, 0, 1, 1], [], []>} : vector<8x32xbf16>, vector<32x32xbf16>, vector<8x32xf32> -> vector<8x32xf32>
    %10 = arith.addf %6, %9 : vector<8x32xf32>
    %c0_13 = arith.constant 0 : index
    %c0_14 = arith.constant 0 : index
    %11 = vector.load %arg7[%c0_13, %c0_14] : memref<1x32xf32, #tpu.memory_space<vmem>>, vector<1x32xf32>
    %12 = vector.broadcast %11 : vector<1x32xf32> to vector<8x32xf32>
    %13 = arith.addf %10, %12 : vector<8x32xf32>
    %cst_15 = arith.constant 0.000000e+00 : f32
    %14 = vector.broadcast %cst_15 : f32 to vector<8x32xf32>
    %15 = arith.maximumf %13, %14 : vector<8x32xf32>
    %c0_16 = arith.constant 0 : index
    %c0_17 = arith.constant 0 : index
    %16 = vector.load %arg8[%c0_16, %c0_17] : memref<1x32xf32, #tpu.memory_space<vmem>>, vector<1x32xf32>
    %17 = vector.broadcast %16 : vector<1x32xf32> to vector<8x32xf32>
    %18 = arith.mulf %15, %17 : vector<8x32xf32>
    %cst_18 = arith.constant dense<0.000000e+00> : vector<8xf32>
    %19 = vector.multi_reduction <add>, %18, %cst_18 [1] : vector<8x32xf32> to vector<8xf32>
    %20 = vector.shape_cast %19 : vector<8xf32> to vector<8x1xf32>
    %c0_19 = arith.constant 0 : index
    %c0_20 = arith.constant 0 : index
    %21 = memref.load %arg9[%c0_19, %c0_20] : memref<1x1xf32, #tpu.memory_space<smem>>
    %22 = vector.broadcast %21 : f32 to vector<8x1xf32>
    %23 = arith.addf %20, %22 : vector<8x1xf32>
    %24 = arith.negf %23 : vector<8x1xf32>
    %25 = math.exp %24 : vector<8x1xf32>
    %cst_21 = arith.constant 1.000000e+00 : f32
    %26 = vector.broadcast %cst_21 : f32 to vector<8x1xf32>
    %27 = arith.addf %26, %25 : vector<8x1xf32>
    %28 = arith.divf %26, %27 : vector<8x1xf32>
    %c0_22 = arith.constant 0 : index
    %c0_23 = arith.constant 0 : index
    %29 = vector.load %arg10[%c0_22, %c0_23] : memref<8x1xf32, #tpu.memory_space<vmem>>, vector<8x1xf32>
    tpu.vector_store %arg10[%c0_22, %c0_23], %28 {strides = array<i32>} : memref<8x1xf32, #tpu.memory_space<vmem>>, vector<8x1xf32>,
    return
  }
  func.func @transform_0(%arg0: i32) -> (i32, i32) {
    %c0_i32 = arith.constant 0 : i32
    %c0_i32_0 = arith.constant 0 : i32
    return %arg0, %c0_i32 : i32, i32
  }
  func.func @transform_1(%arg0: i32) -> (i32, i32) {
    %c0_i32 = arith.constant 0 : i32
    %c0_i32_0 = arith.constant 0 : i32
    return %arg0, %c0_i32 : i32, i32
  }
  func.func @transform_2(%arg0: i32) -> (i32, i32) {
    %c0_i32 = arith.constant 0 : i32
    %c0_i32_0 = arith.constant 0 : i32
    return %arg0, %c0_i32 : i32, i32
  }
  func.func @transform_3(%arg0: i32) -> (i32, i32) {
    %c0_i32 = arith.constant 0 : i32
    %c0_i32_0 = arith.constant 0 : i32
    %c0_i32_1 = arith.constant 0 : i32
    return %c0_i32, %c0_i32_0 : i32, i32
  }
  func.func @transform_4(%arg0: i32) -> (i32, i32) {
    %c0_i32 = arith.constant 0 : i32
    %c0_i32_0 = arith.constant 0 : i32
    %c0_i32_1 = arith.constant 0 : i32
    return %c0_i32, %c0_i32_0 : i32, i32
  }
  func.func @transform_5(%arg0: i32) -> (i32, i32) {
    %c0_i32 = arith.constant 0 : i32
    %c0_i32_0 = arith.constant 0 : i32
    %c0_i32_1 = arith.constant 0 : i32
    return %c0_i32, %c0_i32_0 : i32, i32
  }
  func.func @transform_6(%arg0: i32) -> (i32, i32) {
    %c0_i32 = arith.constant 0 : i32
    %c0_i32_0 = arith.constant 0 : i32
    %c0_i32_1 = arith.constant 0 : i32
    return %c0_i32, %c0_i32_0 : i32, i32
  }
  func.func @transform_7(%arg0: i32) -> (i32, i32) {
    %c0_i32 = arith.constant 0 : i32
    %c0_i32_0 = arith.constant 0 : i32
    %c0_i32_1 = arith.constant 0 : i32
    return %c0_i32, %c0_i32_0 : i32, i32
  }
  func.func @transform_8(%arg0: i32) -> (i32, i32) {
    %c0_i32 = arith.constant 0 : i32
    %c0_i32_0 = arith.constant 0 : i32
    %c0_i32_1 = arith.constant 0 : i32
    return %c0_i32, %c0_i32_0 : i32, i32
  }
  func.func @transform_9(%arg0: i32) -> (i32, i32) {
    %c0_i32 = arith.constant 0 : i32
    %c0_i32_0 = arith.constant 0 : i32
    return %arg0, %c0_i32 : i32, i32
  }
}

</mosaic_0001>

<bundles_post_ra>
// kernel: tpu_custom_call.1
= control target key start
LH: loop header
LB: loop body
LE: loop exit
PB: predicated region body
PF: predicated region fallthrough
CT: control target
= control target key end

     0   :  { %15 = vsyncpa [#allocation4], 0  ;;  %s583_s0 = inlined_call_operand.hbm [shape: bf16[8,32], index: 0, kind: input, shape index: {}]   ;;  %s584_s1 = inlined_call_operand.vmem [shape: bf16[8,16], index: 1, kind: input, shape index: {}]   ;;  %s585_s2 = inlined_call_operand.hbm [shape: bf16[8,32], index: 2, kind: input, shape index: {}]   ;;  %s586_s3 = inlined_call_operand.hbm [shape: bf16[32,32], index: 3, kind: input, shape index: {}]   ;;  %s587_s4 = inlined_call_operand.hbm [shape: bf16[16,32], index: 4, kind: input, shape index: {}]   ;;  %s588_s5 = inlined_call_operand.vmem [shape: bf16[32,32], index: 5, kind: input, shape index: {}]   ;;  %s589_s6 = inlined_call_operand.vmem [shape: f32[1,32], index: 6, kind: input, shape index: {}]   ;;  %s590_s7 = inlined_call_operand.vmem [shape: f32[1,32], index: 7, kind: input, shape index: {}]   ;;  %s591_s8 = inlined_call_operand.<no memory space> [shape: f32[1,1], index: 8, kind: input, shape index: {}]   ;;  %s592_s9 = inlined_call_operand.vmem [shape: f32[8,1], index: 9, kind: output, shape index: {}]  }
   0x1   :  { %16 = vsyncpa [#allocation6], 0 }
   0x2   :  { %17 = vsyncpa [#allocation9], 0  ;;  %s450_s30 = smov [#allocation5]   ;;  %s451_s11 = smov [#allocation3]  }
   0x3   :  { %s36_s10 = sshll.u32 %s450_s30, 4  ;;  %s24_s12 = sshll.u32 %s451_s11, 4  ;;  %s37_s10 = int_to_ptr.vmem [resolvable:$true] %s36_s10  ;;  %s25_s12 = int_to_ptr.vmem [resolvable:$true] %s24_s12 }
   0x4   :  { %s356_s15 = scalar_lea.hbm %s585_s2, 64 }
   0x5   :  { %p357_p0 = scmp.ne.s32.totalorder %s585_s2, %s356_s15  ;;  %p360_p1 = scmp.lt.u32.totalorder %s356_s15, %s585_s2 }
   0x7   :  { %p362_p2 = pnand %p360_p1, %p357_p0 }
   0x9   :  { %365 = shalt.err (!%p362_p2)
}
   0xa   :  { %s366_s20 = scalar_lea.vmem %s37_s10, 64  ;;  %p371_p4 = scmp.lt.s32.totalorder %s37_s10, %s37_s10 }
   0xb   :  { %p367_p3 = scmp.ne.s32.totalorder %s37_s10, %s366_s20  ;;  %p372_p5 = scmp.lt.s32.totalorder %s366_s20, %s366_s20 }
   0xd   :  { %p373_p6 = por %p372_p5, %p371_p4 }
   0xf   :  { %p374_p7 = pnand %p373_p6, %p367_p3 }
  0x11   :  { %377 = shalt.err (!%p374_p7)
}
  0x12   :  { %39 = dma.hbm_to_vmem [thread:$0]  %s585_s2, 64, %s37_s10, [#allocation6]  }
  0x13   :  { %s378_s25 = scalar_lea.hbm %s583_s0, 64 }
  0x14   :  { %p379_p8 = scmp.ne.s32.totalorder %s583_s0, %s378_s25  ;;  %p382_p9 = scmp.lt.u32.totalorder %s378_s25, %s583_s0 }
  0x16   :  { %p384_p10 = pnand %p382_p9, %p379_p8 }
  0x18   :  { %387 = shalt.err (!%p384_p10)
}
  0x19   :  { %s388_s30 = scalar_lea.vmem %s25_s12, 64  ;;  %p393_p12 = scmp.lt.s32.totalorder %s25_s12, %s25_s12 }
  0x1a   :  { %p389_p11 = scmp.ne.s32.totalorder %s25_s12, %s388_s30  ;;  %p394_p13 = scmp.lt.s32.totalorder %s388_s30, %s388_s30 }
  0x1c   :  { %p395_p0 = por %p394_p13, %p393_p12 }
  0x1e   :  { %p396_p1 = pnand %p395_p0, %p389_p11 }
  0x20   :  { %399 = shalt.err (!%p396_p1)
}
  0x21   :  { %27 = dma.hbm_to_vmem [thread:$0]  %s583_s0, 64, %s25_s12, [#allocation4]  }
  0x22   :  { %s452_s11 = smov [#allocation7]   ;;  %s400_s16 = scalar_lea.hbm %s586_s3, 256 }
  0x23   :  { %s45_s13 = sshll.u32 %s452_s11, 4  ;;  %p401_p2 = scmp.ne.s32.totalorder %s586_s3, %s400_s16  ;;  %s46_s13 = int_to_ptr.vmem [resolvable:$true] %s45_s13 }
  0x24   :  { %p404_p3 = scmp.lt.u32.totalorder %s400_s16, %s586_s3 }
  0x26   :  { %p406_p4 = pnand %p404_p3, %p401_p2 }
  0x28   :  { %409 = shalt.err (!%p406_p4)
}
  0x29   :  { %s410_s21 = scalar_lea.vmem %s46_s13, 256  ;;  %p415_p6 = scmp.lt.s32.totalorder %s46_s13, %s46_s13 }
  0x2a   :  { %p411_p5 = scmp.ne.s32.totalorder %s46_s13, %s410_s21  ;;  %p416_p7 = scmp.lt.s32.totalorder %s410_s21, %s410_s21 }
  0x2c   :  { %p417_p8 = por %p416_p7, %p415_p6 }
  0x2e   :  { %p418_p9 = pnand %p417_p8, %p411_p5 }
  0x30   :  { %421 = shalt.err (!%p418_p9)
}
  0x31   :  { %s453_s0 = smov 64   ;;  %s454_s12 = smov 4  }
  0x32   :  { %51 = dma.hbm_to_vmem [thread:$0]  %s586_s3, 256, %s46_s13, [#allocation6], %s453_s0, %s453_s0, %s454_s12  }
  0x33   :  { %s455_s24 = smov [#allocation8]   ;;  %s422_s28 = scalar_lea.hbm %s587_s4, 128 }
  0x34   :  { %s57_s25 = sshll.u32 %s455_s24, 4  ;;  %p423_p10 = scmp.ne.s32.totalorder %s587_s4, %s422_s28  ;;  %s58_s25 = int_to_ptr.vmem [resolvable:$true] %s57_s25 }
  0x35   :  { %p426_p11 = scmp.lt.u32.totalorder %s422_s28, %s587_s4 }
  0x37   :  { %p428_p12 = pnand %p426_p11, %p423_p10 }
  0x39   :  { %431 = shalt.err (!%p428_p12)
}
  0x3a   :  { %s432_s11 = scalar_lea.vmem %s58_s25, 128  ;;  %p437_p0 = scmp.lt.s32.totalorder %s58_s25, %s58_s25 }
  0x3b   :  { %p433_p13 = scmp.ne.s32.totalorder %s58_s25, %s432_s11  ;;  %p438_p1 = scmp.lt.s32.totalorder %s432_s11, %s432_s11 }
  0x3d   :  { %p439_p2 = por %p438_p1, %p437_p0 }
  0x3f   :  { %p440_p3 = pnand %p439_p2, %p433_p13 }
  0x41   :  { %443 = shalt.err (!%p440_p3)
}
  0x42   :  { %63 = dma.hbm_to_vmem [thread:$0]  %s587_s4, 128, %s58_s25, [#allocation9], %s453_s0, %s453_s0, %s454_s12  }
  0x43   :  { %444 = dma.done.wait [#allocation4], 64  }
  0x44   :  { %445 = vsyncadd [#allocation4], 4294967232 }
  0x45   :  { %446 = dma.done.wait [#allocation6], 320  }
  0x46   :  { %447 = vsyncadd [#allocation6], 4294966976 }
  0x47   :  { %448 = dma.done.wait [#allocation9], 128  }
  0x48   :  { %449 = vsyncadd [#allocation9], 4294967168  ;;  %v456_v0 = vmov 0.0   ;;  %vm457_vm0 = vmmov 0   ;;  %v347_v1 = vld [vmem:[#allocation8] sm:$0xff]   ;;  %v348_v2 = vld [vmem:[#allocation7] sm:$0xff]   ;;  %v281_v29 = vstv %s591_s8 }
  0x49   :  { %317 = vmatprep.subr.bf16.mxu0 %v456_v0  ;;  %323 = vmatprep.subr.bf16.mxu1 %v456_v0  ;;  %vm99_vm1 = vcmask 130048   ;;  %v90_v3 = vld [vmem:[%s584_s1] sm:$0xf]  ;;  %v349_v4 = vld [vmem:[#allocation7 + $0x8] sm:$0xff]   ;;  %v351_v6 = vld [vmem:[%s588_s5 + $0x8] sm:$0xff]   ;;  %vm155_vm2 = vcmask 261120  }
  0x4a   :  { %319 = vmatprep.mubr.msk.bf16.mxu0 %vm457_vm0, %v456_v0  ;;  %327 = vmatprep.mubr.msk.bf16.mxu1 %vm457_vm0, %v456_v0  ;;  %v350_v5 = vld [vmem:[%s588_s5] sm:$0xff]   ;;  %vm289_vm3 = vcmask 7168  }
  0x4b   :  { %318 = vmatpush3.bf16.msra.mxu0 %v347_v1  ;;  %324 = vmatpush3.bf16.msra.mxu1 %v348_v2  ;;  %v85_v7 = vld [vmem:[#allocation3] sm:$0xf]  ;;  %v199_v8 = vld [vmem:[#allocation5] sm:$0xf] }
  0x4c   :  { %331 = vmatprep.subr.bf16.mxu0 %v456_v0  ;;  %325 = vmatprep.subr.bf16.mxu1 %v456_v0  ;;  %v306_v19 = vld [vmem:[%s589_s6] ss:$0 sm:$0xff] }
  0x4d   :  { %v307_v25 = vld [vmem:[%s590_s7] ss:$0 sm:$0xff] }
  0x4e   :  { %320 = vmatmul.mubr.msk.bf16.vlgmr.msra.gmra.mrb[0].mxu0 %vm99_vm1, %v90_v3 }
  0x4f   :  { %332 = vmatpush3.bf16.msra.mxu0 %v350_v5  ;;  %335 = vmatprep.mubr.msk.bf16.mxu0 %vm457_vm0, %v456_v0 }
  0x50   :  { %326 = vmatpush3.bf16.msra.mxu1 %v349_v4  ;;  %333 = vmatprep.subr.bf16.mxu0 %v456_v0 }
  0x53   :  { %328 = vmatmul.mubr.msk.bf16.vlgmr.msra.gmra.mrb[0].mxu1 %vm155_vm2, %v85_v7  ;;  %334 = vmatpush3.bf16.msra.mxu0 %v351_v6 }
  0x56   :  { %336 = vmatmul.mubr.msk.bf16.vlgmr.msra.gmra.mrb[4].mxu0 %vm155_vm2, %v199_v8 }
 0x121   :  { %v137_v9 = vpop.f32.mrb[0].mxu0 }
 0x122   :  { %v321_v10 = vpop.f32.mrb[1].mxu0 }
 0x123   :  { %v140_v11 = vpop.f32.mrb[2].mxu0 }
 0x124   :  { %v322_v12 = vpop.f32.mrb[3].mxu0 }
 0x126   :  { %v193_v13 = vpop.f32.mrb[0].mxu1 }
 0x127   :  { %v194_v14 = vadd.f32 %v193_v13, %v137_v9  ;;  %v329_v15 = vpop.f32.mrb[1].mxu1 }
 0x128   :  { %v196_v16 = vpop.f32.mrb[2].mxu1 }
 0x129   :  { %v330_v17 = vpop.f32.mrb[3].mxu1  ;;  %v253_v18 = vpop.f32.mrb[4].mxu0 }
 0x12a   :  { %v259_v20 = vadd.f32 %v253_v18, %v194_v14  ;;  %v337_v21 = vpop.f32.mrb[5].mxu0 }
 0x12b   :  { %v256_v22 = vpop.f32.mrb[6].mxu0 }
 0x12c   :  { %v267_v23 = vadd.f32 %v306_v19, %v259_v20  ;;  %v338_v24 = vpop.f32.mrb[7].mxu0 }
 0x12e   :  { %v268_v26 = vmax.f32 %v267_v23, 0.0 }
 0x130   :  { %v276_v27 = vmul.f32 %v307_v25, %v268_v26 }
 0x132   :  { %v277_v28 = vsel %vm155_vm2, %v276_v27, 0.0 }
 0x133   :  { %278 = vadd.xlane.f32.xlu0 %v277_v28 }
 0x1c0   :  { %v279_v30 = vpop.xlane.xlu0 %278 }
 0x1c1   :  { %v282_v31 = vadd.f32 %v281_v29, %v279_v30 }
 0x1c3   :  { %v308_v32 = vmul.f32 -1.442695, %v282_v31 }
 0x1c5   :  { %352 = vpow2.f32 %v308_v32 }
 0x1cf   :  { %v353_v33 = vpop.eup %352 }
 0x1d0   :  { %v286_v34 = vadd.f32 1.0, %v353_v33 }
 0x1d2   :  { %354 = vrcp.f32 %v286_v34 }
 0x1dc   :  { %v355_v35 = vpop.eup %354 }
 0x1dd   :  { %290 = vst.msk [vmem:[%s592_s9] sm:$0xff] %vm289_vm3, %v355_v35 }
 0x1de   :  { %295 = vsyncpa [#allocation4], 1 }
 0x1df   :  { %296 = vsyncpa [#allocation6], 1 }
 0x1e0   :  { %297 = vsyncpa [#allocation9], 1 }

</bundles_post_ra>
